<compile_context>
chip_gen: v5e
topology: v5e:2x2
jax: 0.10.0
libtpu: 0.0.40
codegen_flags: <defaults>
</compile_context>

<pallas_src>
import jax
import jax.numpy as jnp
import numpy as np
from jax.experimental import pallas as pl
from jax.experimental.pallas import tpu as pltpu


def rec_kernel(hist_ref, tgt_ref, uf_ref, wf_ref, b1_ref, w2_ref, b2_ref,
               w3_ref, b3_ref, out_ref):
    tm, H = hist_ref.shape
    UP = uf_ref.shape[1]
    Vp = (wf_ref.shape[0] - UP) // 2
    cdt = wf_ref.dtype                              # compute dtype (bf16 or f32)

    hist = hist_ref[...]                            # [tm, H] int32 (ids, -1 = pad)
    tgt = tgt_ref[...]                              # [tm, 1] int32

    # One-hot / count selection operand.  The +1 history shift is folded into
    # the iota (hist == iota-1  <=>  hist+1 == iota); built once, outside the
    # unrolled loop.  The target id is NOT shifted (matches the torch forward).
    iota = jax.lax.broadcasted_iota(jnp.int32, (tm, Vp), 1)
    iota_m1 = iota - 1

    counts = (hist[:, 0:1] == iota_m1).astype(cdt)  # [tm, Vp], exact (<= H) in bf16
    for h in range(1, H):                           # H is small & static -> unrolled
        counts = counts + (hist[:, h:h + 1] == iota_m1).astype(cdt)
    onehot_tgt = (tgt == iota).astype(cdt)          # [tm, Vp]

    # Every segment is a multiple of 128 lanes -> concat is tile-aligned.
    x1 = jnp.concatenate([counts, onehot_tgt, uf_ref[...]], axis=1)  # [tm, 2Vp+UP]

    # fc1: single MXU matmul over the fused table, f32 accumulation.
    h1 = jnp.dot(x1, wf_ref[...], preferred_element_type=jnp.float32)
    h1 = jnp.maximum(h1.astype(cdt) + b1_ref[...], 0)                # cdt elementwise

    # fc2
    h2 = jnp.dot(h1, w2_ref[...], preferred_element_type=jnp.float32)
    h2 = jnp.maximum(h2.astype(cdt) + b2_ref[...], 0)

    # fc3 against the lane-dense (128-wide) padded weight; store only the real
    # output columns (tiny masked store, no HBM write amplification).
    h3 = jnp.dot(h2, w3_ref[...], preferred_element_type=jnp.float32)  # [tm, 128] f32
    ow = out_ref.shape[1]
    out_ref[...] = h3[:, :ow] + b3_ref[...]


def _round_up(x, m):
    return ((x + m - 1) // m) * m


def _choose_tile(B, tm):
    """Batch tile: large for throughput, multiple of 8, and (when possible)
    small enough that the grid has >= 2 steps so v7x's 2 TensorCores are used."""
    b8 = _round_up(B, 8)
    tm = min(tm, b8)
    if b8 > 8:
        tm = min(tm, _round_up((b8 + 1) // 2, 8))
    return tm


def prepare_rec_params(params, compute_dtype=jnp.bfloat16):
    """One-time (per parameter set) preparation: zero the embedding padding row,
    fold the frozen/fixed tables into fc1, stack the fused fc1 table, transpose
    Linear weights to (in, out), pad fc3 weight to 128 lanes."""
    emb = params["emb"].astype(jnp.float32).at[0].set(0.0)   # ad_embeddings.weight[0,:]=0 (hoisted)
    dense = params["dense"].astype(jnp.float32)              # frozen; row 0 NOT zeroed (matches torch)
    V, D = dense.shape
    EM = emb.shape[1]

    w1t = params["w1"].astype(jnp.float32).T                 # [340, 200]; concat order:
    F1 = w1t.shape[1]
    w1du = w1t[0:D]                                          # user_dense
    w1dt = w1t[D:2 * D]                                      # tgt_dense
    w1su = w1t[2 * D:2 * D + EM]                             # user_sparse
    w1st = w1t[2 * D + EM:2 * D + 2 * EM]                    # tgt_sparse
    w1uf = w1t[2 * D + 2 * EM:]                              # user_features
    U = w1uf.shape[0]

    # Exact algebraic fold of the frozen/fixed tables into fc1.
    a_hist = dense @ w1du + emb @ w1su                       # [V, F1]
    a_tgt = dense @ w1dt + emb @ w1st                        # [V, F1]

    # Stack into one fused fc1 table; each segment padded to a 128 multiple so
    # the in-kernel selection operand is lane-tile aligned.
    Vp = _round_up(V, 128)
    UP = _round_up(max(U, 1), 128)
    wf = jnp.zeros((2 * Vp + UP, F1), jnp.float32)
    wf = wf.at[0:V].set(a_hist)
    wf = wf.at[Vp:Vp + V].set(a_tgt)
    wf = wf.at[2 * Vp:2 * Vp + U].set(w1uf)

    w2t = params["w2"].astype(jnp.float32).T                 # [200, 80]
    F2 = w2t.shape[1]
    w3t = params["w3"].astype(jnp.float32).T                 # [80, 2]
    out_dim = w3t.shape[1]
    w3_pad = jnp.zeros((F2, 128), jnp.float32).at[:, :out_dim].set(w3t)

    return {
        "wf": wf.astype(compute_dtype),
        "b1": params["b1"].reshape(1, -1).astype(compute_dtype),
        "w2": w2t.astype(compute_dtype),
        "b2": params["b2"].reshape(1, -1).astype(compute_dtype),
        "w3": w3_pad.astype(compute_dtype),
        "b3": params["b3"].reshape(1, -1).astype(jnp.float32),   # (1, 2) f32, added post-slice
        "vp": Vp, "up": UP, "u": U, "out_dim": out_dim,
    }


def rec_forward(prepared, user_features, user_ad_history, target_ad_id, *, tm=512):
    B, U = user_features.shape
    H = user_ad_history.shape[1]
    wf = prepared["wf"]
    Kf, F1 = wf.shape
    UP = prepared["up"]
    F2 = prepared["w2"].shape[1]
    OUT = prepared["out_dim"]
    W3P = prepared["w3"].shape[1]
    cdt = wf.dtype

    tm = _choose_tile(B, tm)
    B_pad = _round_up(B, tm)

    hist = user_ad_history.astype(jnp.int32)
    tgt = target_ad_id.reshape((-1, 1)).astype(jnp.int32)
    # user_features pre-cast to the compute dtype and zero-padded to 128 lanes.
    uf = jnp.zeros((B_pad, UP), cdt).at[:B, :U].set(user_features.astype(cdt))
    if B_pad != B:
        pad = B_pad - B
        hist = jnp.pad(hist, ((0, pad), (0, 0)), constant_values=-1)  # benign pad rows
        tgt = jnp.pad(tgt, ((0, pad), (0, 0)))

    row = lambda i: (i, 0)                          # batch-tiled operands
    rep = lambda i: (0, 0)                          # weights resident across the grid

    out = pl.pallas_call(
        rec_kernel,
        out_shape=jax.ShapeDtypeStruct((B_pad, OUT), jnp.float32),
        grid=(B_pad // tm,),
        in_specs=[
            pl.BlockSpec((tm, H), row),             # user_ad_history
            pl.BlockSpec((tm, 1), row),             # target_ad_id
            pl.BlockSpec((tm, UP), row),            # user_features (padded, compute dtype)
            pl.BlockSpec((Kf, F1), rep),            # fused fc1 table [a_hist; a_tgt; w1uf]
            pl.BlockSpec((1, F1), rep),             # b1
            pl.BlockSpec((F1, F2), rep),            # fc2 weight (in, out)
            pl.BlockSpec((1, F2), rep),             # b2
            pl.BlockSpec((F2, W3P), rep),           # fc3 weight, lane-padded to 128
            pl.BlockSpec((1, OUT), rep),            # b3 (real width)
        ],
        out_specs=pl.BlockSpec((tm, OUT), row),     # only the 2 real columns hit HBM
        compiler_params=pltpu.CompilerParams(
            dimension_semantics=("parallel",),      # v7x: shard steps across both TCs
            vmem_limit_bytes=32 * 1024 * 1024),     # explicit budget (v7x-safe)
    )(hist, tgt, uf, wf, prepared["b1"], prepared["w2"], prepared["b2"],
      prepared["w3"], prepared["b3"])

    return out[:B]


def rec_forward_reference(params, user_features, user_ad_history, target_ad_id):
    emb_w = params["emb"].at[0].set(0.0)
    dense_w = params["dense"]
    hist1 = user_ad_history + 1
    tgt1 = target_ad_id.reshape((-1, 1))
    user_sparse = emb_w[hist1].sum(axis=1)
    tgt_sparse = emb_w[tgt1].sum(axis=1)
    user_dense = dense_w[hist1].sum(axis=1)
    tgt_dense = dense_w[tgt1].sum(axis=1)
    x = jnp.concatenate([user_dense, tgt_dense, user_sparse, tgt_sparse,
                         user_features], axis=1)
    x = jnp.maximum(x @ params["w1"].T + params["b1"], 0.0)
    x = jnp.maximum(x @ params["w2"].T + params["b2"], 0.0)
    return x @ params["w3"].T + params["b3"]


if __name__ == "__main__":
    # Small, self-consistent shapes: 2*D + 2*EM + U == 340 (fc1 input width).
    B, H = 4, 8
    NUM_ADS = 127
    V = NUM_ADS + 1            # rows of both embedding tables
    EM = 160                   # em_size
    D = 8                      # ad dense feature dim
    U = 340 - 2 * D - 2 * EM   # user feature dim = 4

    key = jax.random.PRNGKey(0)
    ks = jax.random.split(key, 12)

    params = {
        "emb":   jax.random.normal(ks[0], (V, EM), jnp.float32) * 0.05,
        "dense": jax.random.normal(ks[1], (V, D), jnp.float32) * 0.05,   # frozen table
        "w1":    jax.random.normal(ks[2], (200, 340), jnp.float32) * 0.05,
        "b1":    jax.random.normal(ks[3], (200,), jnp.float32) * 0.05,
        "w2":    jax.random.normal(ks[4], (80, 200), jnp.float32) * 0.05,
        "b2":    jax.random.normal(ks[5], (80,), jnp.float32) * 0.05,
        "w3":    jax.random.normal(ks[6], (2, 80), jnp.float32) * 0.05,
        "b3":    jax.random.normal(ks[7], (2,), jnp.float32) * 0.05,
    }

    user_features = jax.random.normal(ks[8], (B, U), jnp.float32)
    # history ids in [-1, NUM_ADS-1]; -1 is padding (maps to zeroed emb row after +1)
    user_ad_history = jax.random.randint(ks[9], (B, H), -1, NUM_ADS, dtype=jnp.int32)
    target_ad_id = jax.random.randint(ks[10], (B,), 0, NUM_ADS, dtype=jnp.int32)

    ref = jax.block_until_ready(
        rec_forward_reference(params, user_features, user_ad_history, target_ad_id))

    # f32 compute path (v5e-friendly): tight check against the pure-JAX reference.
    prep_f32 = prepare_rec_params(params, compute_dtype=jnp.float32)
    out_f32 = jax.block_until_ready(
        rec_forward(prep_f32, user_features, user_ad_history, target_ad_id))
    np.testing.assert_allclose(np.asarray(out_f32), np.asarray(ref),
                               rtol=2e-3, atol=1e-3)

    # bf16-weight path (v6e/v7x MXU + bf16 VALU fast path, f32 accumulation).
    prep_bf16 = prepare_rec_params(params, compute_dtype=jnp.bfloat16)
    out_bf16 = jax.block_until_ready(
        rec_forward(prep_bf16, user_features, user_ad_history, target_ad_id))
    np.testing.assert_allclose(np.asarray(out_bf16), np.asarray(ref),
                               rtol=2e-2, atol=2e-2)

    print("KERNEL_OK")
</pallas_src>

<mosaic_0001>
module attributes {stable_mosaic.version = 11 : i64} {
  func.func @rec_kernel(%arg0: i32, %arg1: memref<8x8xi32, #tpu.memory_space<vmem>>, %arg2: memref<8x1xi32, #tpu.memory_space<vmem>>, %arg3: memref<8x128xf32, #tpu.memory_space<vmem>>, %arg4: memref<384x200xf32, #tpu.memory_space<vmem>>, %arg5: memref<1x200xf32, #tpu.memory_space<vmem>>, %arg6: memref<200x80xf32, #tpu.memory_space<vmem>>, %arg7: memref<1x80xf32, #tpu.memory_space<vmem>>, %arg8: memref<80x128xf32, #tpu.memory_space<vmem>>, %arg9: memref<1x2xf32, #tpu.memory_space<vmem>>, %arg10: memref<8x2xf32, #tpu.memory_space<vmem>>) attributes {dimension_semantics = [#tpu.dimension_semantics<parallel>], iteration_bounds = array<i64: 1>, scalar_prefetch = 0 : i64, scratch_operands = 0 : i64, tpu.core_type = #tpu.core_type<tc>, window_params = [{transform_indices = @transform_0, window_bounds = array<i64: 8, 8>}, {transform_indices = @transform_1, window_bounds = array<i64: 8, 1>}, {transform_indices = @transform_2, window_bounds = array<i64: 8, 128>}, {pipeline_mode = #tpu.pipeline_mode<synchronous>, transform_indices = @transform_3, window_bounds = array<i64: 384, 200>}, {pipeline_mode = #tpu.pipeline_mode<synchronous>, transform_indices = @transform_4, window_bounds = array<i64: 1, 200>}, {pipeline_mode = #tpu.pipeline_mode<synchronous>, transform_indices = @transform_5, window_bounds = array<i64: 200, 80>}, {pipeline_mode = #tpu.pipeline_mode<synchronous>, transform_indices = @transform_6, window_bounds = array<i64: 1, 80>}, {pipeline_mode = #tpu.pipeline_mode<synchronous>, transform_indices = @transform_7, window_bounds = array<i64: 80, 128>}, {pipeline_mode = #tpu.pipeline_mode<synchronous>, transform_indices = @transform_8, window_bounds = array<i64: 1, 2>}, {transform_indices = @transform_9, window_bounds = array<i64: 8, 2>}]} {
    %c0 = arith.constant 0 : index
    %c0_0 = arith.constant 0 : index
    %0 = vector.load %arg1[%c0, %c0_0] : memref<8x8xi32, #tpu.memory_space<vmem>>, vector<8x8xi32>
    %c0_1 = arith.constant 0 : index
    %c0_2 = arith.constant 0 : index
    %1 = vector.load %arg2[%c0_1, %c0_2] : memref<8x1xi32, #tpu.memory_space<vmem>>, vector<8x1xi32>
    %2 = tpu.iota {dimensions = array<i32: 1>} : vector<8x128xi32>
    %c1_i32 = arith.constant 1 : i32
    %3 = vector.broadcast %c1_i32 : i32 to vector<8x128xi32>
    %4 = arith.subi %2, %3 : vector<8x128xi32>
    %5 = vector.extract_strided_slice %0 {offsets = [0, 0], sizes = [8, 1], strides = [1, 1]} : vector<8x8xi32> to vector<8x1xi32>
    %6 = vector.broadcast %5 : vector<8x1xi32> to vector<8x128xi32>
    %7 = arith.cmpi eq, %6, %4 : vector<8x128xi32>
    %8 = arith.extui %7 : vector<8x128xi1> to vector<8x128xi32>
    %9 = arith.sitofp %8 : vector<8x128xi32> to vector<8x128xf32>
    %10 = vector.extract_strided_slice %0 {offsets = [0, 1], sizes = [8, 1], strides = [1, 1]} : vector<8x8xi32> to vector<8x1xi32>
    %11 = vector.broadcast %10 : vector<8x1xi32> to vector<8x128xi32>
    %12 = arith.cmpi eq, %11, %4 : vector<8x128xi32>
    %13 = arith.extui %12 : vector<8x128xi1> to vector<8x128xi32>
    %14 = arith.sitofp %13 : vector<8x128xi32> to vector<8x128xf32>
    %15 = arith.addf %9, %14 : vector<8x128xf32>
    %16 = vector.extract_strided_slice %0 {offsets = [0, 2], sizes = [8, 1], strides = [1, 1]} : vector<8x8xi32> to vector<8x1xi32>
    %17 = vector.broadcast %16 : vector<8x1xi32> to vector<8x128xi32>
    %18 = arith.cmpi eq, %17, %4 : vector<8x128xi32>
    %19 = arith.extui %18 : vector<8x128xi1> to vector<8x128xi32>
    %20 = arith.sitofp %19 : vector<8x128xi32> to vector<8x128xf32>
    %21 = arith.addf %15, %20 : vector<8x128xf32>
    %22 = vector.extract_strided_slice %0 {offsets = [0, 3], sizes = [8, 1], strides = [1, 1]} : vector<8x8xi32> to vector<8x1xi32>
    %23 = vector.broadcast %22 : vector<8x1xi32> to vector<8x128xi32>
    %24 = arith.cmpi eq, %23, %4 : vector<8x128xi32>
    %25 = arith.extui %24 : vector<8x128xi1> to vector<8x128xi32>
    %26 = arith.sitofp %25 : vector<8x128xi32> to vector<8x128xf32>
    %27 = arith.addf %21, %26 : vector<8x128xf32>
    %28 = vector.extract_strided_slice %0 {offsets = [0, 4], sizes = [8, 1], strides = [1, 1]} : vector<8x8xi32> to vector<8x1xi32>
    %29 = vector.broadcast %28 : vector<8x1xi32> to vector<8x128xi32>
    %30 = arith.cmpi eq, %29, %4 : vector<8x128xi32>
    %31 = arith.extui %30 : vector<8x128xi1> to vector<8x128xi32>
    %32 = arith.sitofp %31 : vector<8x128xi32> to vector<8x128xf32>
    %33 = arith.addf %27, %32 : vector<8x128xf32>
    %34 = vector.extract_strided_slice %0 {offsets = [0, 5], sizes = [8, 1], strides = [1, 1]} : vector<8x8xi32> to vector<8x1xi32>
    %35 = vector.broadcast %34 : vector<8x1xi32> to vector<8x128xi32>
    %36 = arith.cmpi eq, %35, %4 : vector<8x128xi32>
    %37 = arith.extui %36 : vector<8x128xi1> to vector<8x128xi32>
    %38 = arith.sitofp %37 : vector<8x128xi32> to vector<8x128xf32>
    %39 = arith.addf %33, %38 : vector<8x128xf32>
    %40 = vector.extract_strided_slice %0 {offsets = [0, 6], sizes = [8, 1], strides = [1, 1]} : vector<8x8xi32> to vector<8x1xi32>
    %41 = vector.broadcast %40 : vector<8x1xi32> to vector<8x128xi32>
    %42 = arith.cmpi eq, %41, %4 : vector<8x128xi32>
    %43 = arith.extui %42 : vector<8x128xi1> to vector<8x128xi32>
    %44 = arith.sitofp %43 : vector<8x128xi32> to vector<8x128xf32>
    %45 = arith.addf %39, %44 : vector<8x128xf32>
    %46 = vector.extract_strided_slice %0 {offsets = [0, 7], sizes = [8, 1], strides = [1, 1]} : vector<8x8xi32> to vector<8x1xi32>
    %47 = vector.broadcast %46 : vector<8x1xi32> to vector<8x128xi32>
    %48 = arith.cmpi eq, %47, %4 : vector<8x128xi32>
    %49 = arith.extui %48 : vector<8x128xi1> to vector<8x128xi32>
    %50 = arith.sitofp %49 : vector<8x128xi32> to vector<8x128xf32>
    %51 = arith.addf %45, %50 : vector<8x128xf32>
    %52 = vector.broadcast %1 : vector<8x1xi32> to vector<8x128xi32>
    %53 = arith.cmpi eq, %52, %2 : vector<8x128xi32>
    %54 = arith.extui %53 : vector<8x128xi1> to vector<8x128xi32>
    %55 = arith.sitofp %54 : vector<8x128xi32> to vector<8x128xf32>
    %c0_3 = arith.constant 0 : index
    %c0_4 = arith.constant 0 : index
    %56 = vector.load %arg3[%c0_3, %c0_4] : memref<8x128xf32, #tpu.memory_space<vmem>>, vector<8x128xf32>
    %57 = tpu.concatenate %51, %55, %56 in 1 : vector<8x128xf32>, vector<8x128xf32>, vector<8x128xf32> -> vector<8x384xf32>
    %c0_5 = arith.constant 0 : index
    %c0_6 = arith.constant 0 : index
    %58 = vector.load %arg4[%c0_5, %c0_6] : memref<384x200xf32, #tpu.memory_space<vmem>>, vector<384x200xf32>
    %cst = arith.constant dense<0.000000e+00> : vector<8x200xf32>
    %59 = tpu.matmul %57, %58, %cst {dimension_numbers = #tpu.dot_dimension_numbers<[1], [0], [0], [1], [0, 0, 1, 1], [], []>} : vector<8x384xf32>, vector<384x200xf32>, vector<8x200xf32> -> vector<8x200xf32>
    %c0_7 = arith.constant 0 : index
    %c0_8 = arith.constant 0 : index
    %60 = vector.load %arg5[%c0_7, %c0_8] : memref<1x200xf32, #tpu.memory_space<vmem>>, vector<1x200xf32>
    %61 = vector.broadcast %60 : vector<1x200xf32> to vector<8x200xf32>
    %62 = arith.addf %59, %61 : vector<8x200xf32>
    %cst_9 = arith.constant 0.000000e+00 : f32
    %63 = vector.broadcast %cst_9 : f32 to vector<8x200xf32>
    %64 = arith.maximumf %62, %63 : vector<8x200xf32>
    %c0_10 = arith.constant 0 : index
    %c0_11 = arith.constant 0 : index
    %65 = vector.load %arg6[%c0_10, %c0_11] : memref<200x80xf32, #tpu.memory_space<vmem>>, vector<200x80xf32>
    %cst_12 = arith.constant dense<0.000000e+00> : vector<8x80xf32>
    %66 = tpu.matmul %64, %65, %cst_12 {dimension_numbers = #tpu.dot_dimension_numbers<[1], [0], [0], [1], [0, 0, 1, 1], [], []>} : vector<8x200xf32>, vector<200x80xf32>, vector<8x80xf32> -> vector<8x80xf32>
    %c0_13 = arith.constant 0 : index
    %c0_14 = arith.constant 0 : index
    %67 = vector.load %arg7[%c0_13, %c0_14] : memref<1x80xf32, #tpu.memory_space<vmem>>, vector<1x80xf32>
    %68 = vector.broadcast %67 : vector<1x80xf32> to vector<8x80xf32>
    %69 = arith.addf %66, %68 : vector<8x80xf32>
    %cst_15 = arith.constant 0.000000e+00 : f32
    %70 = vector.broadcast %cst_15 : f32 to vector<8x80xf32>
    %71 = arith.maximumf %69, %70 : vector<8x80xf32>
    %c0_16 = arith.constant 0 : index
    %c0_17 = arith.constant 0 : index
    %72 = vector.load %arg8[%c0_16, %c0_17] : memref<80x128xf32, #tpu.memory_space<vmem>>, vector<80x128xf32>
    %cst_18 = arith.constant dense<0.000000e+00> : vector<8x128xf32>
    %73 = tpu.matmul %71, %72, %cst_18 {dimension_numbers = #tpu.dot_dimension_numbers<[1], [0], [0], [1], [0, 0, 1, 1], [], []>} : vector<8x80xf32>, vector<80x128xf32>, vector<8x128xf32> -> vector<8x128xf32>
    %74 = vector.extract_strided_slice %73 {offsets = [0, 0], sizes = [8, 2], strides = [1, 1]} : vector<8x128xf32> to vector<8x2xf32>
    %c0_19 = arith.constant 0 : index
    %c0_20 = arith.constant 0 : index
    %75 = vector.load %arg9[%c0_19, %c0_20] : memref<1x2xf32, #tpu.memory_space<vmem>>, vector<1x2xf32>
    %76 = vector.broadcast %75 : vector<1x2xf32> to vector<8x2xf32>
    %77 = arith.addf %74, %76 : vector<8x2xf32>
    %c0_21 = arith.constant 0 : index
    %c0_22 = arith.constant 0 : index
    %78 = vector.load %arg10[%c0_21, %c0_22] : memref<8x2xf32, #tpu.memory_space<vmem>>, vector<8x2xf32>
    tpu.vector_store %arg10[%c0_21, %c0_22], %77 {strides = array<i32>} : memref<8x2xf32, #tpu.memory_space<vmem>>, vector<8x2xf32>,
    return
  }
  func.func @transform_0(%arg0: i32) -> (i32, i32) {
    %c0_i32 = arith.constant 0 : i32
    %c0_i32_0 = arith.constant 0 : i32
    return %arg0, %c0_i32 : i32, i32
  }
  func.func @transform_1(%arg0: i32) -> (i32, i32) {
    %c0_i32 = arith.constant 0 : i32
    %c0_i32_0 = arith.constant 0 : i32
    return %arg0, %c0_i32 : i32, i32
  }
  func.func @transform_2(%arg0: i32) -> (i32, i32) {
    %c0_i32 = arith.constant 0 : i32
    %c0_i32_0 = arith.constant 0 : i32
    return %arg0, %c0_i32 : i32, i32
  }
  func.func @transform_3(%arg0: i32) -> (i32, i32) {
    %c0_i32 = arith.constant 0 : i32
    %c0_i32_0 = arith.constant 0 : i32
    %c0_i32_1 = arith.constant 0 : i32
    return %c0_i32, %c0_i32_0 : i32, i32
  }
  func.func @transform_4(%arg0: i32) -> (i32, i32) {
    %c0_i32 = arith.constant 0 : i32
    %c0_i32_0 = arith.constant 0 : i32
    %c0_i32_1 = arith.constant 0 : i32
    return %c0_i32, %c0_i32_0 : i32, i32
  }
  func.func @transform_5(%arg0: i32) -> (i32, i32) {
    %c0_i32 = arith.constant 0 : i32
    %c0_i32_0 = arith.constant 0 : i32
    %c0_i32_1 = arith.constant 0 : i32
    return %c0_i32, %c0_i32_0 : i32, i32
  }
  func.func @transform_6(%arg0: i32) -> (i32, i32) {
    %c0_i32 = arith.constant 0 : i32
    %c0_i32_0 = arith.constant 0 : i32
    %c0_i32_1 = arith.constant 0 : i32
    return %c0_i32, %c0_i32_0 : i32, i32
  }
  func.func @transform_7(%arg0: i32) -> (i32, i32) {
    %c0_i32 = arith.constant 0 : i32
    %c0_i32_0 = arith.constant 0 : i32
    %c0_i32_1 = arith.constant 0 : i32
    return %c0_i32, %c0_i32_0 : i32, i32
  }
  func.func @transform_8(%arg0: i32) -> (i32, i32) {
    %c0_i32 = arith.constant 0 : i32
    %c0_i32_0 = arith.constant 0 : i32
    %c0_i32_1 = arith.constant 0 : i32
    return %c0_i32, %c0_i32_0 : i32, i32
  }
  func.func @transform_9(%arg0: i32) -> (i32, i32) {
    %c0_i32 = arith.constant 0 : i32
    %c0_i32_0 = arith.constant 0 : i32
    return %arg0, %c0_i32 : i32, i32
  }
}

</mosaic_0001>

<bundles_post_ra>
// kernel: tpu_custom_call.1
= control target key start
LH: loop header
LB: loop body
LE: loop exit
PB: predicated region body
PF: predicated region fallthrough
CT: control target
= control target key end

     0   :  { %v477_v0 = vmov 0   ;;  %v478_v1 = vmov 2   ;;  %v479_v6 = vmov 4   ;;  %v480_v12 = vmov 1   ;;  %s969_s0 = inlined_call_operand.vmem [shape: s32[8,8], index: 0, kind: input, shape index: {}]   ;;  %s970_s3 = inlined_call_operand.vmem [shape: f32[384,200], index: 3, kind: input, shape index: {}]   ;;  %s971_s1 = inlined_call_operand.vmem [shape: s32[8,1], index: 1, kind: input, shape index: {}]   ;;  %s972_s2 = inlined_call_operand.vmem [shape: f32[8,128], index: 2, kind: input, shape index: {}]   ;;  %s973_s5 = inlined_call_operand.vmem [shape: f32[200,80], index: 5, kind: input, shape index: {}]   ;;  %s974_s6 = inlined_call_operand.vmem [shape: f32[1,80], index: 6, kind: input, shape index: {}]   ;;  %s975_s7 = inlined_call_operand.vmem [shape: f32[80,128], index: 7, kind: input, shape index: {}]   ;;  %s976_s4 = inlined_call_operand.vmem [shape: f32[1,200], index: 4, kind: input, shape index: {}]   ;;  %s977_s8 = inlined_call_operand.vmem [shape: f32[1,2], index: 8, kind: input, shape index: {}]   ;;  %s978_s9 = inlined_call_operand.vmem [shape: f32[8,2], index: 9, kind: output, shape index: {}]  }
   0x1   :  { %466 = vset.pattern.permute.xlu0 %v477_v0  ;;  %468 = vset.pattern.permute.xlu1 %v478_v1  ;;  %v540_v2 = vld [vmem:[%s969_s0] sm:$0xff]  ;;  %v129_v3 = vld [vmem:[%s970_s3 + $0xf0] sm:$0xff]  ;;  %v481_v13 = vmov 3   ;;  %v482_v17 = vmov 5   ;;  %v130_v19 = vld [vmem:[%s970_s3 + $0xf8] sm:$0xff]  ;;  %v483_v28 = vmov 6  }
   0x2   :  { %38 = vperm.xlu0 %466, %v540_v2   ;;  %51 = vperm.xlu1 %468, %v540_v2   ;;  %v127_v4 = vld [vmem:[%s970_s3 + $0xe0] sm:$0xff]  ;;  %v161_v5 = vld [vmem:[%s970_s3 + $0x1f0] sm:$0xff]  ;;  %v128_v23 = vld [vmem:[%s970_s3 + $0xe8] sm:$0xff]  ;;  %v484_v32 = vmov 7   ;;  %vm352_vm9 = vcmask 588800   ;;  %vm407_vm10 = vcmask 654336  }
   0x3   :  { %470 = vset.pattern.permute.xlu2 %v479_v6  ;;  %201 = vmatpush.msra.mxu0 %v129_v3  ;;  %v159_v7 = vld [vmem:[%s970_s3 + $0x1e0] sm:$0xff]  ;;  %v125_v8 = vld [vmem:[%s970_s3 + $0xd0] sm:$0xff]  ;;  %v126_v34 = vld [vmem:[%s970_s3 + $0xd8] sm:$0xff]  ;;  %vm436_vm11 = vcmask 15360  }
   0x4   :  { %65 = vperm.xlu2 %470, %v540_v2   ;;  %221 = vmatpush.msra.mxu1 %v161_v5  ;;  %v157_v9 = vld [vmem:[%s970_s3 + $0x1d0] sm:$0xff]  ;;  %v123_v10 = vld [vmem:[%s970_s3 + $0xc0] sm:$0xff]  ;;  %v124_v47 = vld [vmem:[%s970_s3 + $0xc8] sm:$0xff] }
   0x5   :  { %202 = vmatpush.msra.mxu0 %v127_v4  ;;  %v121_v11 = vld [vmem:[%s970_s3 + $0xb0] sm:$0xff]  ;;  %v155_v14 = vld [vmem:[%s970_s3 + $0x1c0] sm:$0xff]  ;;  %261 = vmatpush.msra.mxu3 %v130_v19  ;;  %v122_v51 = vld [vmem:[%s970_s3 + $0xb8] sm:$0xff] }
   0x6   :  { %222 = vmatpush.msra.mxu1 %v159_v7  ;;  %v119_v15 = vld [vmem:[%s970_s3 + $0xa0] sm:$0xff]  ;;  %v193_v16 = vld [vmem:[%s970_s3 + $0x2f0] sm:$0xff]  ;;  %v162_v52 = vld [vmem:[%s970_s3 + $0x1f8] sm:$0xff] }
   0x7   :  { %203 = vmatpush.msra.mxu0 %v125_v8  ;;  %v153_v18 = vld [vmem:[%s970_s3 + $0x1b0] sm:$0xff]  ;;  %v191_v21 = vld [vmem:[%s970_s3 + $0x2e0] sm:$0xff]  ;;  %241 = vmatpush.msra.mxu2 %v193_v16  ;;  %v120_v55 = vld [vmem:[%s970_s3 + $0xa8] sm:$0xff] }
   0x8   :  { %223 = vmatpush.msra.mxu1 %v157_v9  ;;  %v117_v20 = vld [vmem:[%s970_s3 + $0x90] sm:$0xff]  ;;  %v151_v22 = vld [vmem:[%s970_s3 + $0x1a0] sm:$0xff]  ;;  %262 = vmatpush.msra.mxu3 %v128_v23  ;;  %v160_v56 = vld [vmem:[%s970_s3 + $0x1e8] sm:$0xff] }
   0x9   :  { %204 = vmatpush.msra.mxu0 %v123_v10  ;;  %v115_v24 = vld [vmem:[%s970_s3 + $0x80] sm:$0xff]  ;;  %v189_v25 = vld [vmem:[%s970_s3 + $0x2d0] sm:$0xff]  ;;  %242 = vmatpush.msra.mxu2 %v191_v21  ;;  %v194_v57 = vld [vmem:[%s970_s3 + $0x2f8] sm:$0xff] }
   0xa   :  { %467 = vset.pattern.permute.xlu0 %v480_v12  ;;  %469 = vset.pattern.permute.xlu1 %v481_v13  ;;  %v33_v26 = vld [vmem:[%s971_s1] sm:$0xff]  ;;  %v149_v27 = vld [vmem:[%s970_s3 + $0x190] sm:$0xff]  ;;  %v118_v59 = vld [vmem:[%s970_s3 + $0x98] sm:$0xff] }
   0xb   :  { %44 = vperm.xlu0 %467, %v540_v2   ;;  %58 = vperm.xlu1 %469, %v540_v2   ;;  %v113_v29 = vld [vmem:[%s970_s3 + $0x70] sm:$0xff]  ;;  %v147_v30 = vld [vmem:[%s970_s3 + $0x180] sm:$0xff]  ;;  %v158_v60 = vld [vmem:[%s970_s3 + $0x1d8] sm:$0xff] }
   0xc   :  { %471 = vset.pattern.permute.xlu2 %v482_v17  ;;  %205 = vmatpush.msra.mxu0 %v121_v11  ;;  %v187_v31 = vld [vmem:[%s970_s3 + $0x2c0] sm:$0xff]  ;;  %v145_v35 = vld [vmem:[%s970_s3 + $0x170] sm:$0xff]  ;;  %v192_v61 = vld [vmem:[%s970_s3 + $0x2e8] sm:$0xff] }
   0xd   :  { %72 = vperm.xlu2 %471, %v540_v2   ;;  %224 = vmatpush.msra.mxu1 %v155_v14  ;;  %v111_v33 = vld [vmem:[%s970_s3 + $0x60] sm:$0xff]  ;;  %v109_v36 = vld [vmem:[%s970_s3 + $0x50] sm:$0xff]  ;;  %v116_v63 = vld [vmem:[%s970_s3 + $0x88] sm:$0xff] }
   0xe   :  { %206 = vmatpush.msra.mxu0 %v119_v15  ;;  %243 = vmatpush.msra.mxu2 %v189_v25  ;;  %v143_v37 = vld [vmem:[%s970_s3 + $0x160] sm:$0xff]  ;;  %v141_v39 = vld [vmem:[%s970_s3 + $0x150] sm:$0xff]  ;;  %v190_v1 = vld [vmem:[%s970_s3 + $0x2d8] sm:$0xff] }
   0xf   :  { %225 = vmatpush.msra.mxu1 %v153_v18  ;;  %263 = vmatpush.msra.mxu3 %v126_v34  ;;  %v107_v38 = vld [vmem:[%s970_s3 + $0x40] sm:$0xff]  ;;  %v105_v40 = vld [vmem:[%s970_s3 + $0x30] sm:$0xff]  ;;  %v114_v3 = vld [vmem:[%s970_s3 + $0x78] sm:$0xff] }
  0x10   :  { %207 = vmatpush.msra.mxu0 %v117_v20  ;;  %244 = vmatpush.msra.mxu2 %v187_v31  ;;  %v139_v41 = vld [vmem:[%s970_s3 + $0x140] sm:$0xff]  ;;  %v137_v43 = vld [vmem:[%s970_s3 + $0x130] sm:$0xff]  ;;  %v154_v4 = vld [vmem:[%s970_s3 + $0x1b8] sm:$0xff] }
  0x11   :  { %226 = vmatpush.msra.mxu1 %v151_v22  ;;  %v103_v42 = vld [vmem:[%s970_s3 + $0x20] sm:$0xff]  ;;  %v101_v44 = vld [vmem:[%s970_s3 + $0x10] sm:$0xff]  ;;  %264 = vmatpush.msra.mxu3 %v124_v47  ;;  %v188_v5 = vld [vmem:[%s970_s3 + $0x2c8] sm:$0xff] }
  0x12   :  { %208 = vmatpush.msra.mxu0 %v115_v24  ;;  %v135_v45 = vld [vmem:[%s970_s3 + $0x120] sm:$0xff]  ;;  %v185_v46 = vld [vmem:[%s970_s3 + $0x2b0] sm:$0xff]  ;;  %v112_v7 = vld [vmem:[%s970_s3 + $0x68] sm:$0xff] }
  0x13   :  { %472 = vset.pattern.permute.xlu1 %v483_v28  ;;  %474 = vset.pattern.permute.xlu0 %v477_v0  ;;  %v99_v48 = vld [vmem:[%s970_s3] sm:$0xff]  ;;  %v133_v49 = vld [vmem:[%s970_s3 + $0x110] sm:$0xff]  ;;  %v156_v0 = vld [vmem:[%s970_s3 + $0x1c8] sm:$0xff] }
  0x14   :  { %79 = vperm.xlu1 %472, %v540_v2   ;;  %93 = vperm.xlu0 %474, %v33_v26   ;;  %v183_v50 = vld [vmem:[%s970_s3 + $0x2a0] sm:$0xff]  ;;  %v181_v54 = vld [vmem:[%s970_s3 + $0x290] sm:$0xff]  ;;  %v152_v8 = vld [vmem:[%s970_s3 + $0x1a8] sm:$0xff] }
  0x15   :  { %473 = vset.pattern.permute.xlu2 %v484_v32  ;;  %227 = vmatpush.msra.mxu1 %v149_v27  ;;  %v131_v53 = vld [vmem:[%s970_s3 + $0x100] sm:$0xff]  ;;  %v177_v62 = vld [vmem:[%s970_s3 + $0x270] sm:$0xff]  ;;  %v186_v9 = vld [vmem:[%s970_s3 + $0x2b8] sm:$0xff] }
  0x16   :  { %86 = vperm.xlu2 %473, %v540_v2   ;;  %209 = vmatpush.msra.mxu0 %v113_v29  ;;  %v179_v58 = vld [vmem:[%s970_s3 + $0x280] sm:$0xff]  ;;  %v173_v6 = vld [vmem:[%s970_s3 + $0x250] sm:$0xff]  ;;  %v110_v11 = vld [vmem:[%s970_s3 + $0x58] sm:$0xff] }
  0x17   :  { %228 = vmatpush.msra.mxu1 %v147_v30  ;;  %245 = vmatpush.msra.mxu2 %v185_v46  ;;  %v175_v2 = vld [vmem:[%s970_s3 + $0x260] sm:$0xff]  ;;  %v150_v12 = vld [vmem:[%s970_s3 + $0x198] sm:$0xff]  ;;  %v184_v13 = vld [vmem:[%s970_s3 + $0x2a8] sm:$0xff] }
  0x18   :  { %210 = vmatpush.msra.mxu0 %v111_v33  ;;  %265 = vmatpush.msra.mxu3 %v122_v51  ;;  %v171_v10 = vld [vmem:[%s970_s3 + $0x240] sm:$0xff]  ;;  %v169_v14 = vld [vmem:[%s970_s3 + $0x230] sm:$0xff]  ;;  %v108_v15 = vld [vmem:[%s970_s3 + $0x48] sm:$0xff] }
  0x19   :  { %229 = vmatpush.msra.mxu1 %v145_v35  ;;  %246 = vmatpush.msra.mxu2 %v183_v50  ;;  %v148_v16 = vld [vmem:[%s970_s3 + $0x188] sm:$0xff]  ;;  %v182_v17 = vld [vmem:[%s970_s3 + $0x298] sm:$0xff]  ;;  %v167_v18 = vld [vmem:[%s970_s3 + $0x220] sm:$0xff] }
  0x1a   :  { %211 = vmatpush.msra.mxu0 %v109_v36  ;;  %266 = vmatpush.msra.mxu3 %v120_v55  ;;  %v106_v19 = vld [vmem:[%s970_s3 + $0x38] sm:$0xff]  ;;  %v180_v21 = vld [vmem:[%s970_s3 + $0x288] sm:$0xff]  ;;  %v165_v22 = vld [vmem:[%s970_s3 + $0x210] sm:$0xff] }
  0x1b   :  { %230 = vmatpush.msra.mxu1 %v143_v37  ;;  %247 = vmatpush.msra.mxu2 %v181_v54  ;;  %v146_v20 = vld [vmem:[%s970_s3 + $0x178] sm:$0xff]  ;;  %v104_v23 = vld [vmem:[%s970_s3 + $0x28] sm:$0xff]  ;;  %v163_v26 = vld [vmem:[%s970_s3 + $0x200] sm:$0xff] }
  0x1c   :  { %212 = vmatpush.msra.mxu0 %v107_v38  ;;  %267 = vmatpush.msra.mxu3 %v118_v59  ;;  %v144_v24 = vld [vmem:[%s970_s3 + $0x168] sm:$0xff]  ;;  %v178_v25 = vld [vmem:[%s970_s3 + $0x278] sm:$0xff]  ;;  %v808_v30 = vld [vmem:[%s972_s2] sm:$0xff]  ;;  %v485_v59 = vmov 0.0  }
  0x1d   :  { %231 = vmatpush.msra.mxu1 %v141_v39  ;;  %248 = vmatpush.msra.mxu2 %v179_v58  ;;  %v102_v27 = vld [vmem:[%s970_s3 + $0x18] sm:$0xff]  ;;  %v176_v29 = vld [vmem:[%s970_s3 + $0x268] sm:$0xff]  ;;  %v34_v39 = vlaneseq  ;;  %v347_v54 = vld [vmem:[%s973_s5 + $0xc0] sm:$0xff] }
  0x1e   :  { %213 = vmatpush.msra.mxu0 %v105_v40  ;;  %268 = vmatpush.msra.mxu3 %v116_v63  ;;  %v142_v28 = vld [vmem:[%s970_s3 + $0x158] sm:$0xff]  ;;  %v100_v31 = vld [vmem:[%s970_s3 + $0x8] sm:$0xff]  ;;  %v333_v58 = vld [vmem:[%s973_s5 + $0x50] sm:$0xff] }
  0x1f   :  { %232 = vmatpush.msra.mxu1 %v139_v41  ;;  %249 = vmatpush.msra.mxu2 %v177_v62  ;;  %v140_v32 = vld [vmem:[%s970_s3 + $0x148] sm:$0xff]  ;;  %v174_v33 = vld [vmem:[%s970_s3 + $0x258] sm:$0xff] }
  0x20   :  { %214 = vmatpush.msra.mxu0 %v103_v42  ;;  %269 = vmatpush.msra.mxu3 %v114_v3  ;;  %v138_v34 = vld [vmem:[%s970_s3 + $0x138] sm:$0xff]  ;;  %v172_v35 = vld [vmem:[%s970_s3 + $0x248] sm:$0xff] }
  0x21   :  { %233 = vmatpush.msra.mxu1 %v137_v43  ;;  %250 = vmatpush.msra.mxu2 %v175_v2  ;;  %v136_v37 = vld [vmem:[%s970_s3 + $0x128] sm:$0xff]  ;;  %v170_v38 = vld [vmem:[%s970_s3 + $0x238] sm:$0xff]  ;;  %v331_v2 = vld [vmem:[%s973_s5 + $0x40] sm:$0xff] }
  0x22   :  { %215 = vmatpush.msra.mxu0 %v101_v44  ;;  %270 = vmatpush.msra.mxu3 %v112_v7  ;;  %v134_v40 = vld [vmem:[%s970_s3 + $0x118] sm:$0xff]  ;;  %v168_v41 = vld [vmem:[%s970_s3 + $0x228] sm:$0xff]  ;;  %v844_v44 = vand.u32 127, %v34_v39 }
  0x23   :  { %234 = vmatpush.msra.mxu1 %v135_v45  ;;  %251 = vmatpush.msra.mxu2 %v173_v6  ;;  %v132_v42 = vld [vmem:[%s970_s3 + $0x108] sm:$0xff]  ;;  %v166_v43 = vld [vmem:[%s970_s3 + $0x218] sm:$0xff] }
  0x24   :  { %216 = vmatpush.msra.mxu0 %v99_v48  ;;  %271 = vmatpush.msra.mxu3 %v110_v11  ;;  %v164_v47 = vld [vmem:[%s970_s3 + $0x208] sm:$0xff]  ;;  %v338_v48 = vld [vmem:[%s973_s5 + $0x78] sm:$0xff]  ;;  %v442_v50 = vadd.s32 4294967295, %v844_v44  ;;  %v329_v11 = vld [vmem:[%s973_s5 + $0x30] sm:$0xff] }
  0x25   :  { %235 = vmatpush.msra.mxu1 %v133_v49  ;;  %252 = vmatpush.msra.mxu2 %v171_v10  ;;  %v337_v49 = vld [vmem:[%s973_s5 + $0x70] sm:$0xff]  ;;  %v336_v51 = vld [vmem:[%s973_s5 + $0x68] sm:$0xff]  ;;  %v334_v55 = vld [vmem:[%s973_s5 + $0x58] sm:$0xff] }
  0x26   :  { %281 = vmatpush.msrb.mxu0 %v162_v52  ;;  %272 = vmatpush.msra.mxu3 %v108_v15  ;;  %v332_v63 = vld [vmem:[%s973_s5 + $0x48] sm:$0xff]  ;;  %v330_v6 = vld [vmem:[%s973_s5 + $0x38] sm:$0xff]  ;;  %v486_v15 = vmov 1.0  }
  0x27   :  { %236 = vmatpush.msra.mxu1 %v131_v53  ;;  %253 = vmatpush.msra.mxu2 %v169_v14  ;;  %v335_v53 = vld [vmem:[%s973_s5 + $0x60] sm:$0xff] }
  0x28   :  { %282 = vmatpush.msrb.mxu0 %v160_v56  ;;  %273 = vmatpush.msra.mxu3 %v106_v19 }
  0x29   :  { %301 = vmatpush.msrb.mxu1 %v194_v57  ;;  %254 = vmatpush.msra.mxu2 %v167_v18 }
  0x2a   :  { %283 = vmatpush.msrb.mxu0 %v158_v60  ;;  %274 = vmatpush.msra.mxu3 %v104_v23  ;;  %v345_v23 = vld [vmem:[%s973_s5 + $0xb0] sm:$0xff] }
  0x2b   :  { %302 = vmatpush.msrb.mxu1 %v192_v61  ;;  %255 = vmatpush.msra.mxu2 %v165_v22  ;;  %v326_v22 = vld [vmem:[%s973_s5 + $0x18] sm:$0xff] }
  0x2c   :  { %284 = vmatpush.msrb.mxu0 %v156_v0  ;;  %275 = vmatpush.msra.mxu3 %v102_v27  ;;  %v343_v27 = vld [vmem:[%s973_s5 + $0xa0] sm:$0xff] }
  0x2d   :  { %303 = vmatpush.msrb.mxu1 %v190_v1  ;;  %256 = vmatpush.msra.mxu2 %v163_v26  ;;  %v324_v26 = vld [vmem:[%s973_s5 + $0x8] sm:$0xff] }
  0x2e   :  { %285 = vmatpush.msrb.mxu0 %v154_v4  ;;  %257 = vmatmul.f32.vlgmr.msra.gmra.mxu2 %v808_v30 }
  0x2f   :  { %304 = vmatpush.msrb.mxu1 %v188_v5  ;;  %276 = vmatpush.msra.mxu3 %v100_v31  ;;  %v340_v31 = vld [vmem:[%s973_s5 + $0x88] sm:$0xff] }
  0x30   :  { %286 = vmatpush.msrb.mxu0 %v152_v8  ;;  %356 = vmatpush.msrb.mxu2 %v338_v48 }
  0x31   :  { %305 = vmatpush.msrb.mxu1 %v186_v9  ;;  %383 = vmatpush.msrb.mxu3 %v347_v54  ;;  %v402_v54 = vld [vmem:[%s975_s7 + $0x28] sm:$0xff] }
  0x32   :  { %287 = vmatpush.msrb.mxu0 %v150_v12  ;;  %357 = vmatpush.msrb.mxu2 %v337_v49 }
  0x33   :  { %306 = vmatpush.msrb.mxu1 %v184_v13 }
  0x34   :  { %288 = vmatpush.msrb.mxu0 %v148_v16  ;;  %358 = vmatpush.msrb.mxu2 %v336_v51  ;;  %v328_v16 = vld [vmem:[%s973_s5 + $0x28] sm:$0xff] }
  0x35   :  { %307 = vmatpush.msrb.mxu1 %v182_v17 }
  0x36   :  { %289 = vmatpush.msrb.mxu0 %v146_v20  ;;  %359 = vmatpush.msrb.mxu2 %v335_v53  ;;  %v327_v20 = vld [vmem:[%s973_s5 + $0x20] sm:$0xff] }
  0x37   :  { %308 = vmatpush.msrb.mxu1 %v180_v21  ;;  %v346_v21 = vld [vmem:[%s973_s5 + $0xb8] sm:$0xff] }
  0x38   :  { %290 = vmatpush.msrb.mxu0 %v144_v24  ;;  %360 = vmatpush.msrb.mxu2 %v334_v55  ;;  %v325_v24 = vld [vmem:[%s973_s5 + $0x10] sm:$0xff]  ;;  %v401_v55 = vld [vmem:[%s975_s7 + $0x20] sm:$0xff] }
  0x39   :  { %309 = vmatpush.msrb.mxu1 %v178_v25  ;;  %384 = vmatpush.msrb.mxu3 %v346_v21  ;;  %v344_v25 = vld [vmem:[%s973_s5 + $0xa8] sm:$0xff] }
  0x3a   :  { %291 = vmatpush.msrb.mxu0 %v142_v28  ;;  %361 = vmatpush.msrb.mxu2 %v333_v58  ;;  %v323_v28 = vld [vmem:[%s973_s5] sm:$0xff]  ;;  %v398_v58 = vld [vmem:[%s975_s7 + $0x8] sm:$0xff] }
  0x3b   :  { %310 = vmatpush.msrb.mxu1 %v176_v29  ;;  %385 = vmatpush.msrb.mxu3 %v345_v23  ;;  %v342_v29 = vld [vmem:[%s973_s5 + $0x98] sm:$0xff] }
  0x3c   :  { %292 = vmatpush.msrb.mxu0 %v140_v32  ;;  %362 = vmatpush.msrb.mxu2 %v332_v63  ;;  %v339_v32 = vld [vmem:[%s973_s5 + $0x80] sm:$0xff] }
  0x3d   :  { %311 = vmatpush.msrb.mxu1 %v174_v33  ;;  %386 = vmatpush.msrb.mxu3 %v344_v25  ;;  %v406_v33 = vld [vmem:[%s975_s7 + $0x48] sm:$0xff] }
  0x3e   :  { %293 = vmatpush.msrb.mxu0 %v138_v34  ;;  %363 = vmatpush.msrb.mxu2 %v331_v2  ;;  %v405_v34 = vld [vmem:[%s975_s7 + $0x40] sm:$0xff] }
  0x3f   :  { %312 = vmatpush.msrb.mxu1 %v172_v35  ;;  %387 = vmatpush.msrb.mxu3 %v343_v27  ;;  %v404_v35 = vld [vmem:[%s975_s7 + $0x38] sm:$0xff]  ;;  %v476_v2 = vld [vmem:[%s977_s8] ss:$0 sm:$0xff] }
  0x40   :  { %294 = vmatpush.msrb.mxu0 %v136_v37  ;;  %364 = vmatpush.msrb.mxu2 %v330_v6  ;;  %v195_v37 = vld [vmem:[%s976_s4] sm:$0x3] }
  0x41   :  { %313 = vmatpush.msrb.mxu1 %v170_v38  ;;  %388 = vmatpush.msrb.mxu3 %v342_v29  ;;  %v197_v38 = vperm.slane %v195_v37, 0 }
  0x42   :  { %295 = vmatpush.msrb.mxu0 %v134_v40  ;;  %365 = vmatpush.msrb.mxu2 %v329_v11 }
  0x43   :  { %314 = vmatpush.msrb.mxu1 %v168_v41 }
  0x44   :  { %296 = vmatpush.msrb.mxu0 %v132_v42  ;;  %366 = vmatpush.msrb.mxu2 %v328_v16 }
  0x45   :  { %315 = vmatpush.msrb.mxu1 %v166_v43 }
  0x46   :  { %367 = vmatpush.msrb.mxu2 %v327_v20 }
  0x47   :  { %316 = vmatpush.msrb.mxu1 %v164_v47 }
  0x48   :  { %368 = vmatpush.msrb.mxu2 %v326_v22 }
  0x4a   :  { %369 = vmatpush.msrb.mxu2 %v325_v24 }
  0x4c   :  { %370 = vmatpush.msrb.mxu2 %v324_v26 }
  0x4e   :  { %371 = vmatpush.msrb.mxu2 %v323_v28 }
  0x5e   :  { %v66_v36 = vpop.permute.xlu2 %65 }
  0x5f   :  { %vm67_vm4 = vcmp.eq.s32.totalorder %v66_v36, %v442_v50  ;;  %v403_v36 = vld [vmem:[%s975_s7 + $0x30] sm:$0xff] }
  0x60   :  { %v447_v7 = vsel %vm67_vm4, 1.0, %v485_v59 }
  0x67   :  { %v73_v52 = vpop.permute.xlu2 %72 }
  0x68   :  { %vm74_vm5 = vcmp.eq.s32.totalorder %v73_v52, %v442_v50 }
  0x69   :  { %v448_v12 = vsel %vm74_vm5, 1.0, %v485_v59 }
  0x70   :  { %v87_v4 = vpop.permute.xlu2 %86 }
  0x71   :  { %vm88_vm6 = vcmp.eq.s32.totalorder %v87_v4, %v442_v50 }
  0x72   :  { %v450_v17 = vsel %vm88_vm6, 1.0, %v485_v59 }
  0x74   :  { %v39_v45 = vpop.permute.xlu0 %38  ;;  %v52_v46 = vpop.permute.xlu1 %51 }
  0x75   :  { %vm40_vm0 = vcmp.eq.s32.totalorder %v39_v45, %v442_v50  ;;  %vm53_vm1 = vcmp.eq.s32.totalorder %v52_v46, %v442_v50 }
  0x76   :  { %v443_v60 = vsel %vm40_vm0, 1.0, %v485_v59  ;;  %v445_v0 = vsel %vm53_vm1, 1.0, %v485_v59 }
  0x7d   :  { %v45_v56 = vpop.permute.xlu0 %44  ;;  %v59_v57 = vpop.permute.xlu1 %58 }
  0x7e   :  { %vm46_vm2 = vcmp.eq.s32.totalorder %v45_v56, %v442_v50  ;;  %vm60_vm3 = vcmp.eq.s32.totalorder %v59_v57, %v442_v50  ;;  %v400_v56 = vld [vmem:[%s975_s7 + $0x18] sm:$0xff]  ;;  %v399_v57 = vld [vmem:[%s975_s7 + $0x10] sm:$0xff] }
  0x7f   :  { %v444_v61 = vsel %vm46_vm2, 1.0, %v485_v59  ;;  %v446_v3 = vsel %vm60_vm3, 1.0, %v485_v59 }
  0x80   :  { %v49_v62 = vadd.f32 %v444_v61, %v443_v60  ;;  %v475_v60 = vld [vmem:[%s974_s6] ss:$0 sm:$0xff] }
  0x82   :  { %v56_v1 = vadd.f32 %v445_v0, %v49_v62 }
  0x84   :  { %v63_v5 = vadd.f32 %v446_v3, %v56_v1 }
  0x86   :  { %v70_v8 = vadd.f32 %v447_v7, %v63_v5  ;;  %v80_v9 = vpop.permute.xlu1 %79  ;;  %v94_v10 = vpop.permute.xlu0 %93 }
  0x87   :  { %vm81_vm7 = vcmp.eq.s32.totalorder %v80_v9, %v442_v50  ;;  %vm95_vm8 = vcmp.eq.s32.totalorder %v94_v10, %v844_v44  ;;  %v198_v44 = vperm.slane %v195_v37, 1 }
  0x88   :  { %v77_v13 = vadd.f32 %v448_v12, %v70_v8  ;;  %v449_v14 = vsel %vm81_vm7, 1.0, %v485_v59  ;;  %452 = vmatmul.msk.f32.vlgmr.msra.gmra.mxu1 %vm95_vm8, %v486_v15  ;;  %v397_v59 = vld [vmem:[%s975_s7] sm:$0xff] }
  0x8a   :  { %v84_v18 = vadd.f32 %v449_v14, %v77_v13 }
  0x8c   :  { %v91_v19 = vadd.f32 %v450_v17, %v84_v18 }
  0x8e   :  { %217 = vmatmul.f32.vlgmr.msra.gmra.mxu0 %v91_v19  ;;  %277 = vmatmul.f32.vlgmr.msra.gmra.mxu3 %v91_v19 }
  0x90   :  { %317 = vmatmul.f32.vlgmr.msrb.gmra.mxu1 %v808_v30  ;;  %v341_v30 = vld [vmem:[%s973_s5 + $0x90] sm:$0xff] }
  0x91   :  { %389 = vmatpush.msrb.mxu3 %v341_v30 }
  0x93   :  { %390 = vmatpush.msrb.mxu3 %v340_v31 }
  0x95   :  { %391 = vmatpush.msrb.mxu3 %v339_v32 }
  0x96   :  { %453 = vmatmul.msk.f32.vlgmr.msrb.gmra.mxu0 %vm95_vm8, %v486_v15 }
  0x97   :  { %417 = vmatpush.msra.mxu3 %v406_v33 }
  0x99   :  { %418 = vmatpush.msra.mxu3 %v405_v34 }
  0x9b   :  { %419 = vmatpush.msra.mxu3 %v404_v35 }
  0x9d   :  { %420 = vmatpush.msra.mxu3 %v403_v36 }
  0x9f   :  { %421 = vmatpush.msra.mxu3 %v402_v54 }
  0xa1   :  { %422 = vmatpush.msra.mxu3 %v401_v55 }
  0xa3   :  { %423 = vmatpush.msra.mxu3 %v400_v56 }
  0xa5   :  { %424 = vmatpush.msra.mxu3 %v399_v57 }
  0xa7   :  { %425 = vmatpush.msra.mxu3 %v398_v58 }
  0xa9   :  { %426 = vmatpush.msra.mxu3 %v397_v59 }
  0xb1   :  { %v258_v42 = vpop.f32.mrf.mxu2 }
 0x105   :  { %v238_v39 = vpop.f32.mrf.mxu1 }
 0x10b   :  { %v218_v40 = vpop.f32.mrf.mxu0 }
 0x10c   :  { %v219_v41 = vadd.f32 %v218_v40, %v197_v38 }
 0x10d   :  { %v318_v50 = vpop.f32.mrf.mxu1 }
 0x10e   :  { %v239_v43 = vadd.f32 %v238_v39, %v219_v41 }
 0x110   :  { %v259_v45 = vadd.f32 %v258_v42, %v239_v43 }
 0x111   :  { %v278_v46 = vpop.f32.mrf.mxu3 }
 0x112   :  { %v321_v47 = vmax.f32 %v259_v45, 0.0  ;;  %v279_v48 = vadd.f32 %v278_v46, %v198_v44 }
 0x113   :  { %v298_v49 = vpop.f32.mrf.mxu0 }
 0x114   :  { %v299_v51 = vadd.f32 %v298_v49, %v279_v48  ;;  %372 = vmatmul.f32.vlgmr.msrb.gmra.mxu2 %v321_v47 }
 0x116   :  { %v319_v52 = vadd.f32 %v318_v50, %v299_v51 }
 0x118   :  { %v322_v53 = vmax.f32 %v319_v52, 0.0 }
 0x11a   :  { %454 = vmatmul.msk.f32.vlgmr.msrb.gmra.mxu3 %vm352_vm9, %v322_v53 }
 0x197   :  { %v373_v61 = vpop.f32.mrf.mxu2 }
 0x198   :  { %v374_v62 = vadd.f32 %v475_v60, %v373_v61 }
 0x19d   :  { %v393_v63 = vpop.f32.mrf.mxu3 }
 0x19e   :  { %v394_v0 = vadd.f32 %v393_v63, %v374_v62 }
 0x1a0   :  { %v396_v1 = vmax.f32 %v394_v0, 0.0 }
 0x1a2   :  { %455 = vmatmul.msk.f32.vlgmr.msra.gmra.mxu3 %vm407_vm10, %v396_v1 }
 0x225   :  { %v428_v3 = vpop.f32.mrf.mxu3 }
 0x226   :  { %v435_v4 = vadd.f32 %v476_v2, %v428_v3 }
 0x228   :  { %437 = vst.msk [vmem:[%s978_s9] sm:$0xff] %vm436_vm11, %v435_v4 }

</bundles_post_ra>
